<compile_context>
chip_gen: v6e
topology: v6e:2x2x1
jax: 0.10.0
libtpu: 0.0.40
codegen_flags: <defaults>
</compile_context>

<pallas_src>
import numpy as np
import jax
import jax.numpy as jnp
from jax import lax
from jax.experimental import pallas as pl
from jax.experimental.pallas import tpu as pltpu

# -------- model sizes (small, consistent with the module's __init__) --------
V = 64        # cfg.vocab_size
E = 32        # embed_size
H = 32        # hidden_size
D = 4         # degree_size
B = 2         # batch
TZ = 8        # len of z sequence
TU = 10       # len of u sequence

TUP = 16              # u length padded per batch to a sublane multiple
VTZ = V + TZ          # 72
ZROWS = B * TZ        # 16
UROWS = B * TUP       # 32
HROW = ZROWS + UROWS  # 48  -> rows HROW:HROW+B hold h0 (+ [m_emb|degree] in lanes 32:68)
ACT_ROWS = 56         # HROW + B, padded to a multiple of 8
OUT_W = 128
GIN = E + D + 2 * H   # 100 (GRU input width)
GIN_PAD = 104         # padded to a multiple of 8 (rows 100:104 of W2 are zero)
W2_ROWS = 208         # 0:100 gWih | 104:112 bias/v vectors | 112:208 pW (padded)


# ------------------------------- Pallas kernel ------------------------------
def _decoder_kernel(act_ref, wall_ref, w2_ref, out_ref):
    # ---- one fused 2D MXU dot for every encoder / hidden projection --------
    acts = act_ref[:, 0:H]                                    # (56, 32)
    proj = jnp.dot(acts, wall_ref[...],
                   preferred_element_type=jnp.float32)        # (56, 256)

    # ---- packed bias / v vectors (static views of the weight slab) ---------
    vecs = w2_ref[104:112, :]                                 # (8, 128)
    az_b, az_v = vecs[0:1, 0:H], vecs[0:1, H:2 * H]
    au_b, au_v = vecs[0:1, 2 * H:3 * H], vecs[0:1, 3 * H:4 * H]
    cb = vecs[1:2, 0:H]
    pb = vecs[1:2, H:H + VTZ]            # (1, 72); lanes 64:72 are -1e9 (gen padding)
    gb_ih = vecs[2:3, 0:3 * H]
    gb_hh = vecs[3:4, 0:3 * H]

    h0 = acts[HROW:HROW + B, :]                               # (B, H)
    md = act_ref[HROW:HROW + B, H:H + E + D]                  # (B, E+D)  [m_emb|degree]

    e_hz = proj[HROW:HROW + B, 3 * H:4 * H]                   # (B, H)   h0 @ az_Wh
    e_hu = proj[HROW:HROW + B, 4 * H:5 * H]                   # (B, H)   h0 @ au_Wh
    gh = proj[HROW:HROW + B, 5 * H:8 * H] + gb_hh             # (B, 3H)  h0 @ gW_h + b_hh

    # mask for the padded u positions (TU..TUP-1)
    umask = jnp.where(
        lax.broadcasted_iota(jnp.int32, (TUP, 1), 0) < TU,
        jnp.float32(0.0), jnp.float32(-1e9))                  # (TUP, 1)

    def attend_one(e_e, e_h_b, bvec, vvec, enc, mask):
        # e_e, enc: (T, H);  e_h_b, bvec, vvec: (1, H);  mask: (T, 1) or None
        energy = jnp.tanh(e_e + e_h_b + bvec)                 # (T, H)
        score = jnp.sum(energy * vvec, axis=1, keepdims=True)  # (T, 1)
        if mask is not None:
            score = score + mask
        m = jnp.max(score, axis=0, keepdims=True)
        w = jnp.exp(score - m)
        w = w / jnp.sum(w, axis=0, keepdims=True)             # softmax over T
        return jnp.sum(w * enc, axis=0, keepdims=True)        # (1, H)

    # per-batch attention (B=2, unrolled at trace time; all math stays 2D)
    z_ctx_rows, u_ctx_rows = [], []
    for b in range(B):
        zr0 = b * TZ
        ur0 = ZROWS + b * TUP
        z_ctx_rows.append(attend_one(
            proj[zr0:zr0 + TZ, 0:H], e_hz[b:b + 1, :],
            az_b, az_v, acts[zr0:zr0 + TZ, :], None))
        u_ctx_rows.append(attend_one(
            proj[ur0:ur0 + TUP, 2 * H:3 * H], e_hu[b:b + 1, :],
            au_b, au_v, acts[ur0:ur0 + TUP, :], umask))
    z_ctx = jnp.concatenate(z_ctx_rows, axis=0)               # (B, H)
    u_ctx = jnp.concatenate(u_ctx_rows, axis=0)               # (B, H)

    # ---- single-step GRU: one fused input-projection dot ---------------------
    gru_in = jnp.concatenate(
        [md, u_ctx, z_ctx, jnp.zeros((B, GIN_PAD - GIN), jnp.float32)], axis=1)
    gi = jnp.dot(gru_in, w2_ref[0:GIN_PAD, 0:3 * H],
                 preferred_element_type=jnp.float32) + gb_ih  # (B, 3H)
    r = jax.nn.sigmoid(gi[:, 0:H] + gh[:, 0:H])
    zg = jax.nn.sigmoid(gi[:, H:2 * H] + gh[:, H:2 * H])
    n = jnp.tanh(gi[:, 2 * H:3 * H] + r * gh[:, 2 * H:3 * H])
    h_new = (1.0 - zg) * n + zg * h0                          # (B, H)

    # ---- generation scores (pW pre-padded so gen is born V+TZ wide) ----------
    gen_in = jnp.concatenate([z_ctx, u_ctx, h_new], axis=1)   # (B, 3H)
    gen = jnp.dot(gen_in, w2_ref[112:112 + 3 * H, 0:VTZ],
                  preferred_element_type=jnp.float32) + pb    # (B, V+TZ)

    # ---- copy scores (per batch, 2D; sparse matrix lives in the act slab) ----
    copy_rows = []
    for b in range(B):
        zr0 = b * TZ
        cz = jnp.tanh(proj[zr0:zr0 + TZ, H:2 * H] + cb)       # (TZ, H)
        cs = jnp.sum(cz * h_new[b:b + 1, :], axis=1, keepdims=True)   # (TZ, 1)
        cm = jnp.max(cs, axis=0, keepdims=True)               # (1, 1)
        ce = jnp.exp(cs - cm)
        csum = jnp.sum(ce * act_ref[zr0:zr0 + TZ, H:H + VTZ],
                       axis=0, keepdims=True)                 # (1, V+TZ)
        copy_rows.append(jnp.log(csum) + cm)
    copy_log = jnp.concatenate(copy_rows, axis=0)             # (B, V+TZ)

    # ---- joint softmax over cat([gen, copy]) ----------------------------------
    mj = jnp.maximum(jnp.max(gen, axis=1, keepdims=True),
                     jnp.max(copy_log, axis=1, keepdims=True))
    eg = jnp.exp(gen - mj)                                    # gen pad cols -> 0
    ec = jnp.exp(copy_log - mj)
    proba = (eg + ec) / (jnp.sum(eg, axis=1, keepdims=True)
                         + jnp.sum(ec, axis=1, keepdims=True))  # (B, V+TZ)

    # ---- single lane-dense full-width store: [proba | h_new | 0] --------------
    out_ref[...] = jnp.concatenate(
        [proba, h_new, jnp.zeros((B, OUT_W - VTZ - H), jnp.float32)], axis=1)


# ------------------------- weight packing (call ONCE) ------------------------
def pack_weights(p):
    """Hoisted out of the per-token path: pack all decoder weights into 2 slabs."""
    W_all = jnp.concatenate(
        [p["az_We"], p["cW"], p["au_We"], p["az_Wh"], p["au_Wh"], p["gW_h"]],
        axis=1).astype(jnp.float32)                                       # (H, 8H)

    gWih = jnp.concatenate([p["gW_m"], p["gW_d"], p["gW_u"], p["gW_z"]], axis=0)
    pW = jnp.concatenate([p["pW_z"], p["pW_u"], p["pW_g"]], axis=0)       # (3H, V)
    pW_pad = jnp.concatenate([pW, jnp.zeros((3 * H, TZ), jnp.float32)], axis=1)
    pb_pad = jnp.concatenate(
        [p["pb"], jnp.full((1, TZ), -1e9, jnp.float32)], axis=1)          # (1, V+TZ)

    W2 = jnp.zeros((W2_ROWS, 128), jnp.float32)
    W2 = W2.at[0:GIN, 0:3 * H].set(gWih)
    W2 = W2.at[104:105, 0:H].set(p["az_b"])
    W2 = W2.at[104:105, H:2 * H].set(p["az_v"])
    W2 = W2.at[104:105, 2 * H:3 * H].set(p["au_b"])
    W2 = W2.at[104:105, 3 * H:4 * H].set(p["au_v"])
    W2 = W2.at[105:106, 0:H].set(p["cb"])
    W2 = W2.at[105:106, H:H + VTZ].set(pb_pad)
    W2 = W2.at[106:107, 0:3 * H].set(p["gb_ih"])
    W2 = W2.at[107:108, 0:3 * H].set(p["gb_hh"])
    W2 = W2.at[112:112 + 3 * H, 0:VTZ].set(pW_pad)
    return {"emb": p["emb"].astype(jnp.float32), "W_all": W_all, "W2": W2}


# ------------------------------ wrapper (jitted) ------------------------------
@jax.jit
def response_decoder_forward(packed, z_enc_out, u_enc_out, m_t_input,
                             degree_input, last_hidden, sparse_z):
    """One decode step. sparse_z is hoisted (fixed per response). The transposes /
    concats below fuse into the single act-slab build under jit (no extra dispatch)."""
    z_b = jnp.transpose(z_enc_out, (1, 0, 2)).astype(jnp.float32).reshape(ZROWS, H)
    u_b = jnp.transpose(u_enc_out, (1, 0, 2)).astype(jnp.float32)
    u_b = jnp.concatenate(
        [u_b, jnp.zeros((B, TUP - TU, H), jnp.float32)], axis=1).reshape(UROWS, H)
    h0 = last_hidden[0].astype(jnp.float32)
    m_emb = packed["emb"][m_t_input[0]]                                   # (B, E)
    md = jnp.concatenate([m_emb, degree_input.astype(jnp.float32)], axis=1)

    act = jnp.zeros((ACT_ROWS, 128), jnp.float32)
    act = act.at[0:ZROWS, 0:H].set(z_b)
    act = act.at[0:ZROWS, H:H + VTZ].set(
        sparse_z.reshape(ZROWS, VTZ).astype(jnp.float32))
    act = act.at[ZROWS:HROW, 0:H].set(u_b)
    act = act.at[HROW:HROW + B, 0:H].set(h0)
    act = act.at[HROW:HROW + B, H:H + E + D].set(md)

    out = pl.pallas_call(
        _decoder_kernel,
        out_shape=jax.ShapeDtypeStruct((B, OUT_W), jnp.float32),
        in_specs=[pl.BlockSpec(memory_space=pltpu.MemorySpace.VMEM)] * 3,
        out_specs=pl.BlockSpec(memory_space=pltpu.MemorySpace.VMEM),
    )(act, packed["W_all"], packed["W2"])

    proba = out[:, 0:VTZ]
    last_hidden_new = out[:, VTZ:VTZ + H][None]               # (1, B, H)
    gru_out = last_hidden_new                                 # 1-step GRU: identical
    return proba, last_hidden_new, gru_out


# ------------------- sparse selective copy matrix (vectorized) ---------------
def get_sparse_selective_input(z_input_np):
    # TODO(synk): vocabulary-dependent requestable-slot branch
    # (vocab.decode(w) in ['address','phone',...] -> '<slot>_SLOT') is omitted;
    # only the numeric UNK/copy and ordinary-token branches are reproduced.
    z = jnp.asarray(z_input_np)                                  # (TZ, B) int
    Tz, Bn = z.shape
    w = z[:-1, :]                                                # (TZ-1, B)
    is_copy = (w == 2) | (w >= V)
    t_idx = jnp.arange(Tz - 1)
    col = jnp.where(is_copy, V + t_idx[:, None], w)
    val = jnp.where(is_copy, 5.0, 1.0)
    oh = jax.nn.one_hot(col, V + Tz, dtype=jnp.float32)          # (TZ-1, B, V+TZ)
    rows = jnp.where(oh > 0.5, val[:, :, None], 1e-10)
    first = jnp.full((1, Bn, V + Tz), 1e-10, jnp.float32)
    result = jnp.concatenate([first, rows], axis=0)              # (TZ, B, V+TZ)
    return jnp.transpose(result, (1, 0, 2)).astype(jnp.float32)  # (B, TZ, V+TZ)


# ------------------------------ pure-JAX reference ---------------------------
def reference_forward(p, z_enc_out, u_enc_out, m_t_input, degree_input,
                      last_hidden, sparse_z):
    z_enc = jnp.transpose(z_enc_out, (1, 0, 2))
    u_enc = jnp.transpose(u_enc_out, (1, 0, 2))
    m_emb = p["emb"][m_t_input[0]]
    h0 = last_hidden[0]

    def attend(enc, Wh, We, b, v):
        e = jnp.tanh(jnp.einsum("bth,hk->btk", enc, We) + (h0 @ Wh)[:, None, :] + b)
        s = jnp.sum(e * v, axis=-1)
        w = jax.nn.softmax(s, axis=-1)
        return jnp.einsum("bt,bth->bh", w, enc)

    z_ctx = attend(z_enc, p["az_Wh"], p["az_We"], p["az_b"], p["az_v"])
    u_ctx = attend(u_enc, p["au_Wh"], p["au_We"], p["au_b"], p["au_v"])

    gi = (m_emb @ p["gW_m"] + u_ctx @ p["gW_u"] + z_ctx @ p["gW_z"]
          + degree_input @ p["gW_d"] + p["gb_ih"])
    gh = h0 @ p["gW_h"] + p["gb_hh"]
    r = jax.nn.sigmoid(gi[:, :H] + gh[:, :H])
    zg = jax.nn.sigmoid(gi[:, H:2 * H] + gh[:, H:2 * H])
    n = jnp.tanh(gi[:, 2 * H:] + r * gh[:, 2 * H:])
    h_new = (1.0 - zg) * n + zg * h0

    gen = z_ctx @ p["pW_z"] + u_ctx @ p["pW_u"] + h_new @ p["pW_g"] + p["pb"]

    cz = jnp.tanh(jnp.einsum("bth,hk->btk", z_enc, p["cW"]) + p["cb"])
    cs = jnp.einsum("bth,bh->bt", cz, h_new)
    cmax = jnp.max(cs, axis=1, keepdims=True)
    ce = jnp.exp(cs - cmax)
    copy = jnp.log(jnp.einsum("bt,btv->bv", ce, sparse_z)) + cmax

    scores = jax.nn.softmax(jnp.concatenate([gen, copy], axis=1), axis=1)
    gen_s, copy_s = scores[:, :V], scores[:, V:]
    proba = jnp.concatenate([gen_s + copy_s[:, :V], copy_s[:, V:]], axis=1)
    return proba, h_new[None], h_new[None]


# ---------------------------------- main -------------------------------------
if __name__ == "__main__":
    key = jax.random.PRNGKey(0)
    ks = jax.random.split(key, 40)

    def rnd(k, shape, scale=0.2):
        return (scale * jax.random.normal(k, shape)).astype(jnp.float32)

    params = {
        "emb":   rnd(ks[0], (V, E)),
        # attn_z / attn_u : Linear(2H -> H) split into hidden/encoder halves (transposed)
        "az_Wh": rnd(ks[1], (H, H)), "az_We": rnd(ks[2], (H, H)),
        "az_b":  rnd(ks[3], (1, H)), "az_v": rnd(ks[4], (1, H), 1.0 / np.sqrt(H)),
        "au_Wh": rnd(ks[5], (H, H)), "au_We": rnd(ks[6], (H, H)),
        "au_b":  rnd(ks[7], (1, H)), "au_v": rnd(ks[8], (1, H), 1.0 / np.sqrt(H)),
        # GRU(E + 2H + D -> H), input weight split by gru_in concat order (transposed)
        "gW_m":  rnd(ks[9], (E, 3 * H)), "gW_u": rnd(ks[10], (H, 3 * H)),
        "gW_z":  rnd(ks[11], (H, 3 * H)), "gW_d": rnd(ks[12], (D, 3 * H)),
        "gb_ih": rnd(ks[13], (1, 3 * H)),
        "gW_h":  rnd(ks[14], (H, 3 * H)), "gb_hh": rnd(ks[15], (1, 3 * H)),
        # proj: Linear(3H -> V) split by [z_ctx, u_ctx, gru_out] (transposed)
        "pW_z":  rnd(ks[16], (H, V)), "pW_u": rnd(ks[17], (H, V)),
        "pW_g":  rnd(ks[18], (H, V)), "pb": rnd(ks[19], (1, V)),
        # proj_copy2: Linear(H -> H) (transposed)
        "cW":    rnd(ks[20], (H, H)), "cb": rnd(ks[21], (1, H)),
    }

    z_enc_out = rnd(ks[22], (TZ, B, H), 0.5)
    u_enc_out = rnd(ks[23], (TU, B, H), 0.5)
    m_t_input = jax.random.randint(ks[24], (1, B), 0, V)
    degree_input = rnd(ks[25], (B, D), 1.0)
    last_hidden = rnd(ks[26], (1, B, H), 0.5)
    z_input_np = np.asarray(jax.random.randint(ks[27], (TZ, B), 0, V + 4))
    # u_input_np is an argument of the original forward() but never used by it.

    packed = pack_weights(params)                       # hoisted: once at setup
    sparse_z = get_sparse_selective_input(z_input_np)   # hoisted: once per response

    proba, new_hidden, gru_out = response_decoder_forward(
        packed, z_enc_out, u_enc_out, m_t_input, degree_input, last_hidden, sparse_z)
    jax.block_until_ready((proba, new_hidden, gru_out))

    proba_ref, hid_ref, gru_ref = reference_forward(
        params, z_enc_out, u_enc_out, m_t_input, degree_input, last_hidden, sparse_z)

    assert np.allclose(np.asarray(proba), np.asarray(proba_ref), atol=1e-4, rtol=1e-3)
    assert np.allclose(np.asarray(new_hidden), np.asarray(hid_ref), atol=1e-4, rtol=1e-3)
    assert np.allclose(np.asarray(gru_out), np.asarray(gru_ref), atol=1e-4, rtol=1e-3)
    assert np.allclose(np.sum(np.asarray(proba), axis=1), 1.0, atol=1e-4)

    print("KERNEL_OK")
</pallas_src>

<mosaic_0001>
module attributes {stable_mosaic.version = 11 : i64} {
  func.func @_decoder_kernel(%arg0: memref<56x128xf32, #tpu.memory_space<vmem>>, %arg1: memref<32x256xf32, #tpu.memory_space<vmem>>, %arg2: memref<208x128xf32, #tpu.memory_space<vmem>>, %arg3: memref<2x128xf32, #tpu.memory_space<vmem>>) attributes {dimension_semantics = [], scalar_prefetch = 0 : i64, scratch_operands = 0 : i64, tpu.core_type = #tpu.core_type<tc>} {
    %c0 = arith.constant 0 : index
    %c0_0 = arith.constant 0 : index
    %0 = vector.load %arg0[%c0, %c0_0] : memref<56x128xf32, #tpu.memory_space<vmem>>, vector<56x32xf32>
    %c0_1 = arith.constant 0 : index
    %c0_2 = arith.constant 0 : index
    %1 = vector.load %arg1[%c0_1, %c0_2] : memref<32x256xf32, #tpu.memory_space<vmem>>, vector<32x256xf32>
    %cst = arith.constant dense<0.000000e+00> : vector<56x256xf32>
    %2 = tpu.matmul %0, %1, %cst {dimension_numbers = #tpu.dot_dimension_numbers<[1], [0], [0], [1], [0, 0, 1, 1], [], []>} : vector<56x32xf32>, vector<32x256xf32>, vector<56x256xf32> -> vector<56x256xf32>
    %c104 = arith.constant 104 : index
    %c0_3 = arith.constant 0 : index
    %3 = vector.load %arg2[%c104, %c0_3] : memref<208x128xf32, #tpu.memory_space<vmem>>, vector<8x128xf32>
    %4 = vector.extract_strided_slice %3 {offsets = [0, 0], sizes = [1, 32], strides = [1, 1]} : vector<8x128xf32> to vector<1x32xf32>
    %5 = vector.extract_strided_slice %3 {offsets = [0, 32], sizes = [1, 32], strides = [1, 1]} : vector<8x128xf32> to vector<1x32xf32>
    %6 = vector.extract_strided_slice %3 {offsets = [0, 64], sizes = [1, 32], strides = [1, 1]} : vector<8x128xf32> to vector<1x32xf32>
    %7 = vector.extract_strided_slice %3 {offsets = [0, 96], sizes = [1, 32], strides = [1, 1]} : vector<8x128xf32> to vector<1x32xf32>
    %8 = vector.extract_strided_slice %3 {offsets = [1, 0], sizes = [1, 32], strides = [1, 1]} : vector<8x128xf32> to vector<1x32xf32>
    %9 = vector.extract_strided_slice %3 {offsets = [1, 32], sizes = [1, 72], strides = [1, 1]} : vector<8x128xf32> to vector<1x72xf32>
    %10 = vector.extract_strided_slice %3 {offsets = [2, 0], sizes = [1, 96], strides = [1, 1]} : vector<8x128xf32> to vector<1x96xf32>
    %11 = vector.extract_strided_slice %3 {offsets = [3, 0], sizes = [1, 96], strides = [1, 1]} : vector<8x128xf32> to vector<1x96xf32>
    %12 = vector.extract_strided_slice %0 {offsets = [48, 0], sizes = [2, 32], strides = [1, 1]} : vector<56x32xf32> to vector<2x32xf32>
    %c48 = arith.constant 48 : index
    %c32 = arith.constant 32 : index
    %13 = vector.load %arg0[%c48, %c32] : memref<56x128xf32, #tpu.memory_space<vmem>>, vector<2x36xf32>
    %14 = vector.extract_strided_slice %2 {offsets = [48, 96], sizes = [2, 32], strides = [1, 1]} : vector<56x256xf32> to vector<2x32xf32>
    %15 = vector.extract_strided_slice %2 {offsets = [48, 128], sizes = [2, 32], strides = [1, 1]} : vector<56x256xf32> to vector<2x32xf32>
    %16 = vector.extract_strided_slice %2 {offsets = [48, 160], sizes = [2, 96], strides = [1, 1]} : vector<56x256xf32> to vector<2x96xf32>
    %17 = vector.broadcast %11 : vector<1x96xf32> to vector<2x96xf32>
    %18 = arith.addf %16, %17 : vector<2x96xf32>
    %19 = tpu.iota {dimensions = array<i32: 0>} : vector<16x1xi32>
    %c10_i32 = arith.constant 10 : i32
    %20 = vector.broadcast %c10_i32 : i32 to vector<16x1xi32>
    %21 = arith.cmpi slt, %19, %20 : vector<16x1xi32>
    %cst_4 = arith.constant 0.000000e+00 : f32
    %cst_5 = arith.constant -1.000000e+09 : f32
    %22 = vector.broadcast %cst_4 : f32 to vector<16x1xf32>
    %23 = vector.broadcast %cst_5 : f32 to vector<16x1xf32>
    %24 = arith.select %21, %22, %23 : vector<16x1xi1>, vector<16x1xf32>
    %25 = vector.extract_strided_slice %2 {offsets = [0, 0], sizes = [8, 32], strides = [1, 1]} : vector<56x256xf32> to vector<8x32xf32>
    %26 = vector.extract_strided_slice %14 {offsets = [0, 0], sizes = [1, 32], strides = [1, 1]} : vector<2x32xf32> to vector<1x32xf32>
    %27 = vector.extract_strided_slice %0 {offsets = [0, 0], sizes = [8, 32], strides = [1, 1]} : vector<56x32xf32> to vector<8x32xf32>
    %28 = vector.broadcast %26 : vector<1x32xf32> to vector<8x32xf32>
    %29 = arith.addf %25, %28 : vector<8x32xf32>
    %30 = vector.broadcast %4 : vector<1x32xf32> to vector<8x32xf32>
    %31 = arith.addf %29, %30 : vector<8x32xf32>
    %32 = math.tanh %31 : vector<8x32xf32>
    %33 = vector.broadcast %5 : vector<1x32xf32> to vector<8x32xf32>
    %34 = arith.mulf %32, %33 : vector<8x32xf32>
    %cst_6 = arith.constant dense<0.000000e+00> : vector<8xf32>
    %35 = vector.multi_reduction <add>, %34, %cst_6 [1] : vector<8x32xf32> to vector<8xf32>
    %36 = vector.shape_cast %35 : vector<8xf32> to vector<8x1xf32>
    %cst_7 = arith.constant dense<0xFF800000> : vector<1xf32>
    %37 = vector.multi_reduction <maximumf>, %36, %cst_7 [0] : vector<8x1xf32> to vector<1xf32>
    %38 = vector.shape_cast %37 : vector<1xf32> to vector<1x1xf32>
    %39 = vector.broadcast %38 : vector<1x1xf32> to vector<8x1xf32>
    %40 = arith.subf %36, %39 : vector<8x1xf32>
    %41 = math.exp %40 : vector<8x1xf32>
    %cst_8 = arith.constant dense<0.000000e+00> : vector<1xf32>
    %42 = vector.multi_reduction <add>, %41, %cst_8 [0] : vector<8x1xf32> to vector<1xf32>
    %43 = vector.shape_cast %42 : vector<1xf32> to vector<1x1xf32>
    %44 = vector.broadcast %43 : vector<1x1xf32> to vector<8x1xf32>
    %45 = arith.divf %41, %44 : vector<8x1xf32>
    %46 = vector.broadcast %45 : vector<8x1xf32> to vector<8x32xf32>
    %47 = arith.mulf %46, %27 : vector<8x32xf32>
    %cst_9 = arith.constant dense<0.000000e+00> : vector<32xf32>
    %48 = vector.multi_reduction <add>, %47, %cst_9 [0] : vector<8x32xf32> to vector<32xf32>
    %49 = vector.shape_cast %48 : vector<32xf32> to vector<1x32xf32>
    %50 = vector.extract_strided_slice %2 {offsets = [16, 64], sizes = [16, 32], strides = [1, 1]} : vector<56x256xf32> to vector<16x32xf32>
    %51 = vector.extract_strided_slice %15 {offsets = [0, 0], sizes = [1, 32], strides = [1, 1]} : vector<2x32xf32> to vector<1x32xf32>
    %52 = vector.extract_strided_slice %0 {offsets = [16, 0], sizes = [16, 32], strides = [1, 1]} : vector<56x32xf32> to vector<16x32xf32>
    %53 = vector.broadcast %51 : vector<1x32xf32> to vector<16x32xf32>
    %54 = arith.addf %50, %53 : vector<16x32xf32>
    %55 = vector.broadcast %6 : vector<1x32xf32> to vector<16x32xf32>
    %56 = arith.addf %54, %55 : vector<16x32xf32>
    %57 = math.tanh %56 : vector<16x32xf32>
    %58 = vector.broadcast %7 : vector<1x32xf32> to vector<16x32xf32>
    %59 = arith.mulf %57, %58 : vector<16x32xf32>
    %cst_10 = arith.constant dense<0.000000e+00> : vector<16xf32>
    %60 = vector.multi_reduction <add>, %59, %cst_10 [1] : vector<16x32xf32> to vector<16xf32>
    %61 = vector.shape_cast %60 : vector<16xf32> to vector<16x1xf32>
    %62 = arith.addf %61, %24 : vector<16x1xf32>
    %cst_11 = arith.constant dense<0xFF800000> : vector<1xf32>
    %63 = vector.multi_reduction <maximumf>, %62, %cst_11 [0] : vector<16x1xf32> to vector<1xf32>
    %64 = vector.shape_cast %63 : vector<1xf32> to vector<1x1xf32>
    %65 = vector.broadcast %64 : vector<1x1xf32> to vector<16x1xf32>
    %66 = arith.subf %62, %65 : vector<16x1xf32>
    %67 = math.exp %66 : vector<16x1xf32>
    %cst_12 = arith.constant dense<0.000000e+00> : vector<1xf32>
    %68 = vector.multi_reduction <add>, %67, %cst_12 [0] : vector<16x1xf32> to vector<1xf32>
    %69 = vector.shape_cast %68 : vector<1xf32> to vector<1x1xf32>
    %70 = vector.broadcast %69 : vector<1x1xf32> to vector<16x1xf32>
    %71 = arith.divf %67, %70 : vector<16x1xf32>
    %72 = vector.broadcast %71 : vector<16x1xf32> to vector<16x32xf32>
    %73 = arith.mulf %72, %52 : vector<16x32xf32>
    %cst_13 = arith.constant dense<0.000000e+00> : vector<32xf32>
    %74 = vector.multi_reduction <add>, %73, %cst_13 [0] : vector<16x32xf32> to vector<32xf32>
    %75 = vector.shape_cast %74 : vector<32xf32> to vector<1x32xf32>
    %76 = vector.extract_strided_slice %2 {offsets = [8, 0], sizes = [8, 32], strides = [1, 1]} : vector<56x256xf32> to vector<8x32xf32>
    %77 = vector.extract_strided_slice %14 {offsets = [1, 0], sizes = [1, 32], strides = [1, 1]} : vector<2x32xf32> to vector<1x32xf32>
    %78 = vector.extract_strided_slice %0 {offsets = [8, 0], sizes = [8, 32], strides = [1, 1]} : vector<56x32xf32> to vector<8x32xf32>
    %79 = vector.broadcast %77 : vector<1x32xf32> to vector<8x32xf32>
    %80 = arith.addf %76, %79 : vector<8x32xf32>
    %81 = vector.broadcast %4 : vector<1x32xf32> to vector<8x32xf32>
    %82 = arith.addf %80, %81 : vector<8x32xf32>
    %83 = math.tanh %82 : vector<8x32xf32>
    %84 = vector.broadcast %5 : vector<1x32xf32> to vector<8x32xf32>
    %85 = arith.mulf %83, %84 : vector<8x32xf32>
    %cst_14 = arith.constant dense<0.000000e+00> : vector<8xf32>
    %86 = vector.multi_reduction <add>, %85, %cst_14 [1] : vector<8x32xf32> to vector<8xf32>
    %87 = vector.shape_cast %86 : vector<8xf32> to vector<8x1xf32>
    %cst_15 = arith.constant dense<0xFF800000> : vector<1xf32>
    %88 = vector.multi_reduction <maximumf>, %87, %cst_15 [0] : vector<8x1xf32> to vector<1xf32>
    %89 = vector.shape_cast %88 : vector<1xf32> to vector<1x1xf32>
    %90 = vector.broadcast %89 : vector<1x1xf32> to vector<8x1xf32>
    %91 = arith.subf %87, %90 : vector<8x1xf32>
    %92 = math.exp %91 : vector<8x1xf32>
    %cst_16 = arith.constant dense<0.000000e+00> : vector<1xf32>
    %93 = vector.multi_reduction <add>, %92, %cst_16 [0] : vector<8x1xf32> to vector<1xf32>
    %94 = vector.shape_cast %93 : vector<1xf32> to vector<1x1xf32>
    %95 = vector.broadcast %94 : vector<1x1xf32> to vector<8x1xf32>
    %96 = arith.divf %92, %95 : vector<8x1xf32>
    %97 = vector.broadcast %96 : vector<8x1xf32> to vector<8x32xf32>
    %98 = arith.mulf %97, %78 : vector<8x32xf32>
    %cst_17 = arith.constant dense<0.000000e+00> : vector<32xf32>
    %99 = vector.multi_reduction <add>, %98, %cst_17 [0] : vector<8x32xf32> to vector<32xf32>
    %100 = vector.shape_cast %99 : vector<32xf32> to vector<1x32xf32>
    %101 = vector.extract_strided_slice %2 {offsets = [32, 64], sizes = [16, 32], strides = [1, 1]} : vector<56x256xf32> to vector<16x32xf32>
    %102 = vector.extract_strided_slice %15 {offsets = [1, 0], sizes = [1, 32], strides = [1, 1]} : vector<2x32xf32> to vector<1x32xf32>
    %103 = vector.extract_strided_slice %0 {offsets = [32, 0], sizes = [16, 32], strides = [1, 1]} : vector<56x32xf32> to vector<16x32xf32>
    %104 = vector.broadcast %102 : vector<1x32xf32> to vector<16x32xf32>
    %105 = arith.addf %101, %104 : vector<16x32xf32>
    %106 = vector.broadcast %6 : vector<1x32xf32> to vector<16x32xf32>
    %107 = arith.addf %105, %106 : vector<16x32xf32>
    %108 = math.tanh %107 : vector<16x32xf32>
    %109 = vector.broadcast %7 : vector<1x32xf32> to vector<16x32xf32>
    %110 = arith.mulf %108, %109 : vector<16x32xf32>
    %cst_18 = arith.constant dense<0.000000e+00> : vector<16xf32>
    %111 = vector.multi_reduction <add>, %110, %cst_18 [1] : vector<16x32xf32> to vector<16xf32>
    %112 = vector.shape_cast %111 : vector<16xf32> to vector<16x1xf32>
    %113 = arith.addf %112, %24 : vector<16x1xf32>
    %cst_19 = arith.constant dense<0xFF800000> : vector<1xf32>
    %114 = vector.multi_reduction <maximumf>, %113, %cst_19 [0] : vector<16x1xf32> to vector<1xf32>
    %115 = vector.shape_cast %114 : vector<1xf32> to vector<1x1xf32>
    %116 = vector.broadcast %115 : vector<1x1xf32> to vector<16x1xf32>
    %117 = arith.subf %113, %116 : vector<16x1xf32>
    %118 = math.exp %117 : vector<16x1xf32>
    %cst_20 = arith.constant dense<0.000000e+00> : vector<1xf32>
    %119 = vector.multi_reduction <add>, %118, %cst_20 [0] : vector<16x1xf32> to vector<1xf32>
    %120 = vector.shape_cast %119 : vector<1xf32> to vector<1x1xf32>
    %121 = vector.broadcast %120 : vector<1x1xf32> to vector<16x1xf32>
    %122 = arith.divf %118, %121 : vector<16x1xf32>
    %123 = vector.broadcast %122 : vector<16x1xf32> to vector<16x32xf32>
    %124 = arith.mulf %123, %103 : vector<16x32xf32>
    %cst_21 = arith.constant dense<0.000000e+00> : vector<32xf32>
    %125 = vector.multi_reduction <add>, %124, %cst_21 [0] : vector<16x32xf32> to vector<32xf32>
    %126 = vector.shape_cast %125 : vector<32xf32> to vector<1x32xf32>
    %127 = tpu.concatenate %49, %100 in 0 : vector<1x32xf32>, vector<1x32xf32> -> vector<2x32xf32>
    %128 = tpu.concatenate %75, %126 in 0 : vector<1x32xf32>, vector<1x32xf32> -> vector<2x32xf32>
    %cst_22 = arith.constant 0.000000e+00 : f32
    %129 = vector.broadcast %cst_22 : f32 to vector<2x4xf32>
    %130 = tpu.concatenate %13, %128, %127, %129 in 1 : vector<2x36xf32>, vector<2x32xf32>, vector<2x32xf32>, vector<2x4xf32> -> vector<2x104xf32>
    %c0_23 = arith.constant 0 : index
    %c0_24 = arith.constant 0 : index
    %131 = vector.load %arg2[%c0_23, %c0_24] : memref<208x128xf32, #tpu.memory_space<vmem>>, vector<104x96xf32>
    %cst_25 = arith.constant dense<0.000000e+00> : vector<2x96xf32>
    %132 = tpu.matmul %130, %131, %cst_25 {dimension_numbers = #tpu.dot_dimension_numbers<[1], [0], [0], [1], [0, 0, 1, 1], [], []>} : vector<2x104xf32>, vector<104x96xf32>, vector<2x96xf32> -> vector<2x96xf32>
    %133 = vector.broadcast %10 : vector<1x96xf32> to vector<2x96xf32>
    %134 = arith.addf %132, %133 : vector<2x96xf32>
    %135 = vector.extract_strided_slice %134 {offsets = [0, 0], sizes = [2, 32], strides = [1, 1]} : vector<2x96xf32> to vector<2x32xf32>
    %136 = vector.extract_strided_slice %18 {offsets = [0, 0], sizes = [2, 32], strides = [1, 1]} : vector<2x96xf32> to vector<2x32xf32>
    %137 = arith.addf %135, %136 : vector<2x32xf32>
    %138 = arith.negf %137 : vector<2x32xf32>
    %139 = math.exp %138 : vector<2x32xf32>
    %cst_26 = arith.constant 1.000000e+00 : f32
    %140 = vector.broadcast %cst_26 : f32 to vector<2x32xf32>
    %141 = arith.addf %140, %139 : vector<2x32xf32>
    %142 = arith.divf %140, %141 : vector<2x32xf32>
    %143 = vector.extract_strided_slice %134 {offsets = [0, 32], sizes = [2, 32], strides = [1, 1]} : vector<2x96xf32> to vector<2x32xf32>
    %144 = vector.extract_strided_slice %18 {offsets = [0, 32], sizes = [2, 32], strides = [1, 1]} : vector<2x96xf32> to vector<2x32xf32>
    %145 = arith.addf %143, %144 : vector<2x32xf32>
    %146 = arith.negf %145 : vector<2x32xf32>
    %147 = math.exp %146 : vector<2x32xf32>
    %cst_27 = arith.constant 1.000000e+00 : f32
    %148 = vector.broadcast %cst_27 : f32 to vector<2x32xf32>
    %149 = arith.addf %148, %147 : vector<2x32xf32>
    %150 = arith.divf %148, %149 : vector<2x32xf32>
    %151 = vector.extract_strided_slice %134 {offsets = [0, 64], sizes = [2, 32], strides = [1, 1]} : vector<2x96xf32> to vector<2x32xf32>
    %152 = vector.extract_strided_slice %18 {offsets = [0, 64], sizes = [2, 32], strides = [1, 1]} : vector<2x96xf32> to vector<2x32xf32>
    %153 = arith.mulf %142, %152 : vector<2x32xf32>
    %154 = arith.addf %151, %153 : vector<2x32xf32>
    %155 = math.tanh %154 : vector<2x32xf32>
    %cst_28 = arith.constant 1.000000e+00 : f32
    %156 = vector.broadcast %cst_28 : f32 to vector<2x32xf32>
    %157 = arith.subf %156, %150 : vector<2x32xf32>
    %158 = arith.mulf %157, %155 : vector<2x32xf32>
    %159 = arith.mulf %150, %12 : vector<2x32xf32>
    %160 = arith.addf %158, %159 : vector<2x32xf32>
    %161 = tpu.concatenate %127, %128, %160 in 1 : vector<2x32xf32>, vector<2x32xf32>, vector<2x32xf32> -> vector<2x96xf32>
    %c112 = arith.constant 112 : index
    %c0_29 = arith.constant 0 : index
    %162 = vector.load %arg2[%c112, %c0_29] : memref<208x128xf32, #tpu.memory_space<vmem>>, vector<96x72xf32>
    %cst_30 = arith.constant dense<0.000000e+00> : vector<2x72xf32>
    %163 = tpu.matmul %161, %162, %cst_30 {dimension_numbers = #tpu.dot_dimension_numbers<[1], [0], [0], [1], [0, 0, 1, 1], [], []>} : vector<2x96xf32>, vector<96x72xf32>, vector<2x72xf32> -> vector<2x72xf32>
    %164 = vector.broadcast %9 : vector<1x72xf32> to vector<2x72xf32>
    %165 = arith.addf %163, %164 : vector<2x72xf32>
    %166 = vector.extract_strided_slice %2 {offsets = [0, 32], sizes = [8, 32], strides = [1, 1]} : vector<56x256xf32> to vector<8x32xf32>
    %167 = vector.broadcast %8 : vector<1x32xf32> to vector<8x32xf32>
    %168 = arith.addf %166, %167 : vector<8x32xf32>
    %169 = math.tanh %168 : vector<8x32xf32>
    %170 = vector.extract_strided_slice %160 {offsets = [0, 0], sizes = [1, 32], strides = [1, 1]} : vector<2x32xf32> to vector<1x32xf32>
    %171 = vector.broadcast %170 : vector<1x32xf32> to vector<8x32xf32>
    %172 = arith.mulf %169, %171 : vector<8x32xf32>
    %cst_31 = arith.constant dense<0.000000e+00> : vector<8xf32>
    %173 = vector.multi_reduction <add>, %172, %cst_31 [1] : vector<8x32xf32> to vector<8xf32>
    %174 = vector.shape_cast %173 : vector<8xf32> to vector<8x1xf32>
    %cst_32 = arith.constant dense<0xFF800000> : vector<1xf32>
    %175 = vector.multi_reduction <maximumf>, %174, %cst_32 [0] : vector<8x1xf32> to vector<1xf32>
    %176 = vector.shape_cast %175 : vector<1xf32> to vector<1x1xf32>
    %177 = vector.broadcast %176 : vector<1x1xf32> to vector<8x1xf32>
    %178 = arith.subf %174, %177 : vector<8x1xf32>
    %179 = math.exp %178 : vector<8x1xf32>
    %c0_33 = arith.constant 0 : index
    %c32_34 = arith.constant 32 : index
    %180 = vector.load %arg0[%c0_33, %c32_34] : memref<56x128xf32, #tpu.memory_space<vmem>>, vector<8x72xf32>
    %181 = vector.broadcast %179 : vector<8x1xf32> to vector<8x72xf32>
    %182 = arith.mulf %181, %180 : vector<8x72xf32>
    %cst_35 = arith.constant dense<0.000000e+00> : vector<72xf32>
    %183 = vector.multi_reduction <add>, %182, %cst_35 [0] : vector<8x72xf32> to vector<72xf32>
    %184 = vector.shape_cast %183 : vector<72xf32> to vector<1x72xf32>
    %185 = math.log %184 : vector<1x72xf32>
    %186 = vector.broadcast %176 : vector<1x1xf32> to vector<1x72xf32>
    %187 = arith.addf %185, %186 : vector<1x72xf32>
    %188 = vector.extract_strided_slice %2 {offsets = [8, 32], sizes = [8, 32], strides = [1, 1]} : vector<56x256xf32> to vector<8x32xf32>
    %189 = vector.broadcast %8 : vector<1x32xf32> to vector<8x32xf32>
    %190 = arith.addf %188, %189 : vector<8x32xf32>
    %191 = math.tanh %190 : vector<8x32xf32>
    %192 = vector.extract_strided_slice %160 {offsets = [1, 0], sizes = [1, 32], strides = [1, 1]} : vector<2x32xf32> to vector<1x32xf32>
    %193 = vector.broadcast %192 : vector<1x32xf32> to vector<8x32xf32>
    %194 = arith.mulf %191, %193 : vector<8x32xf32>
    %cst_36 = arith.constant dense<0.000000e+00> : vector<8xf32>
    %195 = vector.multi_reduction <add>, %194, %cst_36 [1] : vector<8x32xf32> to vector<8xf32>
    %196 = vector.shape_cast %195 : vector<8xf32> to vector<8x1xf32>
    %cst_37 = arith.constant dense<0xFF800000> : vector<1xf32>
    %197 = vector.multi_reduction <maximumf>, %196, %cst_37 [0] : vector<8x1xf32> to vector<1xf32>
    %198 = vector.shape_cast %197 : vector<1xf32> to vector<1x1xf32>
    %199 = vector.broadcast %198 : vector<1x1xf32> to vector<8x1xf32>
    %200 = arith.subf %196, %199 : vector<8x1xf32>
    %201 = math.exp %200 : vector<8x1xf32>
    %c8 = arith.constant 8 : index
    %c32_38 = arith.constant 32 : index
    %202 = vector.load %arg0[%c8, %c32_38] : memref<56x128xf32, #tpu.memory_space<vmem>>, vector<8x72xf32>
    %203 = vector.broadcast %201 : vector<8x1xf32> to vector<8x72xf32>
    %204 = arith.mulf %203, %202 : vector<8x72xf32>
    %cst_39 = arith.constant dense<0.000000e+00> : vector<72xf32>
    %205 = vector.multi_reduction <add>, %204, %cst_39 [0] : vector<8x72xf32> to vector<72xf32>
    %206 = vector.shape_cast %205 : vector<72xf32> to vector<1x72xf32>
    %207 = math.log %206 : vector<1x72xf32>
    %208 = vector.broadcast %198 : vector<1x1xf32> to vector<1x72xf32>
    %209 = arith.addf %207, %208 : vector<1x72xf32>
    %210 = tpu.concatenate %187, %209 in 0 : vector<1x72xf32>, vector<1x72xf32> -> vector<2x72xf32>
    %cst_40 = arith.constant dense<0xFF800000> : vector<2xf32>
    %211 = vector.multi_reduction <maximumf>, %165, %cst_40 [1] : vector<2x72xf32> to vector<2xf32>
    %212 = vector.shape_cast %211 : vector<2xf32> to vector<2x1xf32>
    %cst_41 = arith.constant dense<0xFF800000> : vector<2xf32>
    %213 = vector.multi_reduction <maximumf>, %210, %cst_41 [1] : vector<2x72xf32> to vector<2xf32>
    %214 = vector.shape_cast %213 : vector<2xf32> to vector<2x1xf32>
    %215 = arith.maximumf %212, %214 : vector<2x1xf32>
    %216 = vector.broadcast %215 : vector<2x1xf32> to vector<2x72xf32>
    %217 = arith.subf %165, %216 : vector<2x72xf32>
    %218 = math.exp %217 : vector<2x72xf32>
    %219 = vector.broadcast %215 : vector<2x1xf32> to vector<2x72xf32>
    %220 = arith.subf %210, %219 : vector<2x72xf32>
    %221 = math.exp %220 : vector<2x72xf32>
    %222 = arith.addf %218, %221 : vector<2x72xf32>
    %cst_42 = arith.constant dense<0.000000e+00> : vector<2xf32>
    %223 = vector.multi_reduction <add>, %218, %cst_42 [1] : vector<2x72xf32> to vector<2xf32>
    %224 = vector.shape_cast %223 : vector<2xf32> to vector<2x1xf32>
    %cst_43 = arith.constant dense<0.000000e+00> : vector<2xf32>
    %225 = vector.multi_reduction <add>, %221, %cst_43 [1] : vector<2x72xf32> to vector<2xf32>
    %226 = vector.shape_cast %225 : vector<2xf32> to vector<2x1xf32>
    %227 = arith.addf %224, %226 : vector<2x1xf32>
    %228 = vector.broadcast %227 : vector<2x1xf32> to vector<2x72xf32>
    %229 = arith.divf %222, %228 : vector<2x72xf32>
    %cst_44 = arith.constant 0.000000e+00 : f32
    %230 = vector.broadcast %cst_44 : f32 to vector<2x24xf32>
    %231 = tpu.concatenate %229, %160, %230 in 1 : vector<2x72xf32>, vector<2x32xf32>, vector<2x24xf32> -> vector<2x128xf32>
    %c0_45 = arith.constant 0 : index
    %c0_46 = arith.constant 0 : index
    %232 = vector.load %arg3[%c0_45, %c0_46] : memref<2x128xf32, #tpu.memory_space<vmem>>, vector<2x128xf32>
    tpu.vector_store %arg3[%c0_45, %c0_46], %231 {strides = array<i32>} : memref<2x128xf32, #tpu.memory_space<vmem>>, vector<2x128xf32>,
    return
  }
}

</mosaic_0001>

<bundles_post_ra>
// kernel: response_decoder_forward.1
= control target key start
LH: loop header
LB: loop body
LE: loop exit
PB: predicated region body
PF: predicated region fallthrough
CT: control target
= control target key end

     0   :  { %v154_v0 = vlaneseq  ;;  %v919_v4 = vmov 0.0   ;;  %vm29_vm0 = vcmask 261120   ;;  %s920_s8 = smov 96   ;;  %s921_s17 = smov 32   ;;  %vm924_vm2 = vmmov 0   ;;  %s1280_s1 = inlined_call_operand.vmem [shape: f32[32,256], index: 1, kind: input, shape index: {}]   ;;  %s1281_s2 = inlined_call_operand.vmem [shape: f32[208,128], index: 2, kind: input, shape index: {}]   ;;  %s1282_s0 = inlined_call_operand.vmem [shape: f32[56,128], index: 0, kind: input, shape index: {}]   ;;  %s1283_s3 = inlined_call_operand.vmem [shape: f32[2,128], index: 3, kind: output, shape index: {}]  }
   0x1   :  { %v28_v1 = vld [vmem:[%s1280_s1 + $0x38] sm:$0xff]  ;;  %v27_v2 = vld [vmem:[%s1280_s1 + $0x30] sm:$0xff]  ;;  %v26_v3 = vld [vmem:[%s1280_s1 + $0x28] sm:$0xff]  ;;  %145 = vmatprep.mubr.f32.mxu1 %v919_v4  ;;  %115 = vmatprep.mubr.f32.mxu0 %v919_v4  ;;  %s922_s18 = smov 64   ;;  %vm390_vm3 = vcmask 1040384   ;;  %s926_s21 = smov 68  }
   0x2   :  { %846 = vmatprep.subr.mxu1 %v28_v1  ;;  %v25_v5 = vld [vmem:[%s1280_s1 + $0x20] sm:$0xff]  ;;  %75 = vmatprep.subr.mxu0 %v28_v1  ;;  %v962_v6 = vshrl.u32 %v154_v0, 7  ;;  %v24_v7 = vld [vmem:[%s1280_s1 + $0x18] sm:$0xff]  ;;  %v23_v8 = vld [vmem:[%s1280_s1 + $0x10] sm:$0xff]  ;;  %vm405_vm4 = vcmask 293888   ;;  %vm407_vm5 = vcmask 556032  }
   0x3   :  { %850 = vmatpush1.msra.mxu1 %v27_v2  ;;  %76 = vmatpush1.msra.mxu0 %v27_v2  ;;  %v22_v10 = vld [vmem:[%s1280_s1 + $0x8] sm:$0xff]  ;;  %v21_v11 = vld [vmem:[%s1280_s1] sm:$0xff]  ;;  %v987_v13 = vld [vmem:[%s1282_s0 + $0x30] sm:$0xff]  ;;  %vm409_vm6 = vcmask 818176   ;;  %vm428_vm7 = vcmask 850944   ;;  %vm542_vm8 = vcmask 523264  }
   0x4   :  { %847 = vmatprep.subr.mxu1 %v26_v3  ;;  %77 = vmatprep.subr.mxu0 %v26_v3  ;;  %v971_v9 = vsub.s32 0, %v962_v6  ;;  %v982_v12 = vld [vmem:[%s1281_s2 + $0x68] sm:$0xff]  ;;  %v992_v14 = vld [vmem:[%s1282_s0] sm:$0xff]  ;;  %v1018_v17 = vld [vmem:[%s1282_s0 + $0x10] sm:$0xff]  ;;  %v1057_v28 = vsub.s32 1, %v962_v6  ;;  %vm564_vm9 = vcmask 785408  }
   0x5   :  { %851 = vmatpush1.msra.mxu1 %v25_v5  ;;  %78 = vmatpush1.msra.mxu0 %v25_v5  ;;  %v1006_v16 = vld [vmem:[%s1282_s0 + $0x8] sm:$0xff]  ;;  %v1026_v18 = vld [vmem:[%s1282_s0 + $0x18] sm:$0xff]  ;;  %v1034_v19 = vld [vmem:[%s1282_s0 + $0x20] sm:$0xff]  ;;  %vm666_vm10 = vcmask 851200   ;;  %vm713_vm11 = vcmask 582656   ;;  %vm717_vm12 = vcmask 845056  }
   0x6   :  { %848 = vmatprep.subr.mxu1 %v24_v7  ;;  %79 = vmatprep.subr.mxu0 %v24_v7  ;;  %v996_v15 = vrot.slane %v982_v12, %v971_v9  ;;  %v1042_v20 = vld [vmem:[%s1282_s0 + $0x28] sm:$0xff]  ;;  %vm745_vm13 = vcmask 588800  }
   0x7   :  { %852 = vmatpush1.msra.mxu1 %v23_v8  ;;  %80 = vmatpush1.msra.mxu0 %v23_v8 }
   0x8   :  { %849 = vmatprep.subr.mxu1 %v22_v10  ;;  %81 = vmatprep.subr.mxu0 %v22_v10 }
   0x9   :  { %853 = vmatpush1.msra.mxu1 %v21_v11  ;;  %82 = vmatpush1.msra.mxu0 %v21_v11 }
   0xa   :  { %759 = vmatmul.mubr.msk.f32.vlgmr.msra.gmra.mxu1 %vm29_vm0, %v987_v13  ;;  %753 = vmatmul.mubr.msk.f32.vlgmr.msra.gmra.mxu0 %vm29_vm0, %v992_v14 }
   0xb   :  { %120 = vmatprep.mubr.f32.mxu0 %v919_v4  ;;  %186 = vrot.lane.b32.xlu1 %v996_v15, %s920_s8 }
   0xc   :  { %790 = vmatprep.subr.mxu1 %v919_v4  ;;  %819 = vmatprep.subr.mxu0 %v919_v4 }
   0xd   :  { %816 = vmatprep.mubr.msk.f32.mxu1 %vm924_vm2, %v919_v4 }
   0xe   :  { %754 = vmatmul.mubr.msk.f32.gmra.mxu0 %vm29_vm0, %v1006_v16 }
   0xf   :  { %125 = vmatprep.mubr.f32.mxu0 %v919_v4 }
  0x12   :  { %755 = vmatmul.mubr.msk.f32.gmra.mxu0 %vm29_vm0, %v1018_v17 }
  0x13   :  { %130 = vmatprep.mubr.f32.mxu0 %v919_v4 }
  0x16   :  { %756 = vmatmul.mubr.msk.f32.gmra.mxu0 %vm29_vm0, %v1026_v18 }
  0x17   :  { %135 = vmatprep.mubr.f32.mxu0 %v919_v4 }
  0x1a   :  { %757 = vmatmul.mubr.msk.f32.gmra.mxu0 %vm29_vm0, %v1034_v19 }
  0x1b   :  { %140 = vmatprep.mubr.f32.mxu0 %v919_v4 }
  0x1e   :  { %758 = vmatmul.mubr.msk.f32.gmra.mxu0 %vm29_vm0, %v1042_v20 }
  0x1f   :  { %843 = vmatprep.mubr.msk.f32.mxu0 %vm924_vm2, %v919_v4 }
  0x7d   :  { %v187_v51 = vpop.permute.xlu1 %186 }
  0xca   :  { %v147_v21 = vpop.f32.mrf.mxu1  ;;  %v1046_v22 = vpop.f32.mrf.mxu0 }
  0xcb   :  { %v173_v23 = vrot.slane %v147_v21, %v971_v9  ;;  %v287_v33 = vrot.slane %v147_v21, %v1057_v28 }
  0xcc   :  { %v1049_v24 = vpop.f32.mrf.mxu1  ;;  %v119_v25 = vpop.f32.mrf.mxu0 }
  0xcd   :  { %175 = vrot.lane.b32.xlu1 %v173_v23, %s921_s17  ;;  %v221_v26 = vrot.slane %v1049_v24, %v971_v9  ;;  %v327_v30 = vrot.slane %v1049_v24, %v1057_v28 }
  0xce   :  { %v1054_v27 = vpop.f32.mrf.mxu0 }
  0xcf   :  { %223 = vrot.lane.b32.xlu0 %v221_v26, %s922_s18 }
  0xd0   :  { %v124_v29 = vpop.f32.mrf.mxu0 }
  0xd2   :  { %v127_v31 = vpop.f32.mrf.mxu0 }
  0xd3   :  { %329 = vrot.lane.b32.xlu0 %v327_v30, %s922_s18  ;;  %v156_v30 = vsub.s32 3, %v962_v6 }
  0xd4   :  { %v129_v32 = vpop.f32.mrf.mxu0 }
  0xd5   :  { %v157_v32 = vrot.slane %v982_v12, %v156_v30 }
  0xd6   :  { %v132_v34 = vpop.f32.mrf.mxu0 }
  0xd7   :  { %289 = vrot.lane.b32.xlu0 %v287_v33, %s921_s17  ;;  %v165_v33 = vadd.s32 8, %v962_v6 }
  0xd8   :  { %v134_v35 = vpop.f32.mrf.mxu0 }
  0xd9   :  { %vm167_vm1 = vcmp.lt.s32.totalorder %v165_v33, 10 }
  0xda   :  { %v137_v36 = vpop.f32.mrf.mxu0 }
  0xdc   :  { %v139_v37 = vpop.f32.mrf.mxu0 }
  0xde   :  { %v142_v38 = vpop.f32.mrf.mxu0 }
  0xe0   :  { %v144_v39 = vpop.f32.mrf.mxu0 }
 0x13f   :  { %v176_v59 = vpop.permute.xlu1 %175 }
 0x140   :  { %v178_v61 = vadd.f32 %v176_v59, %v1046_v22 }
 0x141   :  { %v224_v40 = vpop.permute.xlu0 %223 }
 0x142   :  { %v226_v41 = vadd.f32 %v224_v40, %v127_v31  ;;  %v227_v42 = vadd.f32 %v224_v40, %v132_v34  ;;  %v183_v63 = vadd.f32 %v996_v15, %v178_v61  ;;  %v153_v31 = vld [vmem:[%s1282_s0 + $0x30] sm:$0x3]  ;;  %v923_v34 = vmov -1e+09   ;;  %v419_v61 = vld [vmem:[%s1281_s2 + $0x40] sm:$0xff]  ;;  %s925_s0 = smov 36  }
 0x143   :  { %v169_v35 = vsel %vm167_vm1, 0.0, %v923_v34 }
 0x144   :  { %v229_v43 = vadd.f32 %v227_v42, %v996_v15  ;;  %v228_v44 = vadd.f32 %v226_v41, %v996_v15 }
 0x145   :  { %v330_v45 = vpop.permute.xlu0 %329 }
 0x146   :  { %v332_v46 = vadd.f32 %v330_v45, %v137_v36  ;;  %v333_v47 = vadd.f32 %v330_v45, %v142_v38  ;;  %863 = vtanh.f32 %v229_v43  ;;  %v422_v45 = vld [vmem:[%s1281_s2 + $0x58] sm:$0xff] }
 0x147   :  { %865 = vtanh.f32 %v228_v44  ;;  %v423_v44 = vld [vmem:[%s1281_s2 + $0x60] sm:$0xff] }
 0x148   :  { %v335_v48 = vadd.f32 %v333_v47, %v996_v15  ;;  %v334_v49 = vadd.f32 %v332_v46, %v996_v15  ;;  %791 = vmatpush3.msra.mxu1 %v423_v44 }
 0x149   :  { %v290_v60 = vpop.permute.xlu0 %289  ;;  %792 = vmatprep.subr.mxu1 %v919_v4 }
 0x14a   :  { %867 = vtanh.f32 %v335_v48  ;;  %v292_v62 = vadd.f32 %v290_v60, %v1054_v27  ;;  %793 = vmatpush3.msra.mxu1 %v422_v45 }
 0x14b   :  { %869 = vtanh.f32 %v334_v49  ;;  %794 = vmatprep.subr.mxu1 %v919_v4 }
 0x14c   :  { %v293_v0 = vadd.f32 %v292_v62, %v996_v15  ;;  %871 = vtanh.f32 %v183_v63 }
 0x14e   :  { %873 = vtanh.f32 %v293_v0 }
 0x153   :  { %v864_v50 = vpop.eup %863 }
 0x154   :  { %v233_v52 = vmul.f32 %v864_v50, %v187_v51  ;;  %v866_v53 = vpop.eup %865  ;;  %v421_v50 = vld [vmem:[%s1281_s2 + $0x50] sm:$0xff] }
 0x155   :  { %v232_v55 = vmul.f32 %v866_v53, %v187_v51  ;;  %795 = vmatpush3.msra.mxu1 %v421_v50 }
 0x156   :  { %238 = vrot.lane.b32.xlu1 %v233_v52, %s922_s18  ;;  %796 = vmatprep.subr.mxu1 %v919_v4 }
 0x157   :  { %v868_v54 = vpop.eup %867 }
 0x158   :  { %v339_v56 = vmul.f32 %v868_v54, %v187_v51  ;;  %v870_v57 = vpop.eup %869 }
 0x159   :  { %v338_v58 = vmul.f32 %v870_v57, %v187_v51  ;;  %v872_v5 = vpop.eup %871 }
 0x15a   :  { %236 = vrot.lane.b32.xlu1 %v232_v55, %s922_s18  ;;  %344 = vrot.lane.b32.xlu0 %v339_v56, %s922_s18  ;;  %v189_v25 = vmul.f32 %v872_v5, %v187_v51  ;;  %v420_v55 = vld [vmem:[%s1281_s2 + $0x48] sm:$0xff] }
 0x15b   :  { %v874_v8 = vpop.eup %873  ;;  %797 = vmatpush3.msra.mxu1 %v420_v55 }
 0x15c   :  { %v295_v15 = vmul.f32 %v874_v8, %v187_v51  ;;  %v190_v26 = vsel %vm29_vm0, %v189_v25, 0.0  ;;  %798 = vmatprep.subr.mxu1 %v919_v4 }
 0x15d   :  { %799 = vmatpush3.msra.mxu1 %v419_v61 }
 0x15e   :  { %342 = vrot.lane.b32.xlu0 %v338_v58, %s922_s18  ;;  %v296_v29 = vsel %vm29_vm0, %v295_v15, 0.0  ;;  %800 = vmatprep.subr.mxu1 %v919_v4 }
 0x1c8   :  { %v239_v1 = vpop.permute.xlu1 %238 }
 0x1c9   :  { %v245_v2 = vsel %vm29_vm0, %v239_v1, 0.0 }
 0x1ca   :  { %246 = vadd.xlane.f32.xlu1 %v245_v2  ;;  %v418_v2 = vld [vmem:[%s1281_s2 + $0x38] sm:$0xff] }
 0x1cb   :  { %801 = vmatpush3.msra.mxu1 %v418_v2 }
 0x1cc   :  { %v345_v3 = vpop.permute.xlu0 %344  ;;  %v237_v10 = vpop.permute.xlu1 %236  ;;  %802 = vmatprep.subr.mxu1 %v919_v4 }
 0x1cd   :  { %v351_v7 = vsel %vm29_vm0, %v345_v3, 0.0  ;;  %v242_v21 = vsel %vm29_vm0, %v237_v10, 0.0 }
 0x1ce   :  { %352 = vadd.xlane.f32.xlu0 %v351_v7 }
 0x1d0   :  { %v343_v11 = vpop.permute.xlu0 %342 }
 0x1d1   :  { %v348_v23 = vsel %vm29_vm0, %v343_v11, 0.0  ;;  %v417_v11 = vld [vmem:[%s1281_s2 + $0x30] sm:$0xff] }
 0x1d2   :  { %243 = vadd.xlane.f32.xlu0 %v242_v21  ;;  %349 = vadd.xlane.f32.xlu1 %v348_v23 }
 0x1d3   :  { %803 = vmatpush3.msra.mxu1 %v417_v11 }
 0x1d4   :  { %804 = vmatprep.subr.mxu1 %v919_v4 }
 0x1d6   :  { %191 = vadd.xlane.f32.xlu0 %v190_v26  ;;  %297 = vadd.xlane.f32.xlu1 %v296_v29  ;;  %v416_v29 = vld [vmem:[%s1281_s2 + $0x28] sm:$0xff] }
 0x1d7   :  { %805 = vmatpush3.msra.mxu1 %v416_v29 }
 0x1d8   :  { %806 = vmatprep.subr.mxu1 %v919_v4 }
 0x1ec   :  { %394 = vrot.lane.b32.xlu0 %v153_v31, %s920_s8 }
 0x1f0   :  { %159 = vrot.lane.b32.xlu0 %v157_v32, %s921_s17 }
 0x253   :  { %v247_v36 = vpop.xlane.xlu1 %246 }
 0x254   :  { %v1091_v38 = vadd.f32 %v247_v36, %v169_v35 }
 0x257   :  { %v353_v37 = vpop.xlane.xlu0 %352 }
 0x258   :  { %v1093_v39 = vadd.f32 %v353_v37, %v169_v35 }
 0x25b   :  { %v350_v40 = vpop.xlane.xlu1 %349  ;;  %v244_v41 = vpop.xlane.xlu0 %243 }
 0x25c   :  { %v356_v42 = vmax.f32 %v350_v40, %v1093_v39  ;;  %v250_v43 = vmax.f32 %v244_v41, %v1091_v38 }
 0x25e   :  { %v357_v46 = vrot.slane %v356_v42, 4  ;;  %v251_v47 = vrot.slane %v250_v43, 4 }
 0x25f   :  { %v1103_v48 = vpop.xlane.xlu1 %297  ;;  %v1105_v49 = vpop.xlane.xlu0 %191 }
 0x260   :  { %v358_v51 = vmax.f32 %v356_v42, %v357_v46  ;;  %v252_v52 = vmax.f32 %v250_v43, %v251_v47  ;;  %v299_v53 = vrot.slane %v1103_v48, 4  ;;  %v193_v54 = vrot.slane %v1105_v49, 4  ;;  %v414_v42 = vld [vmem:[%s1281_s2 + $0x18] sm:$0xff] }
 0x262   :  { %v359_v56 = vrot.slane %v358_v51, 2  ;;  %v253_v57 = vrot.slane %v252_v52, 2  ;;  %v300_v58 = vmax.f32 %v1103_v48, %v299_v53  ;;  %v194_v59 = vmax.f32 %v1105_v49, %v193_v54 }
 0x263   :  { %v1119_v60 = vpop.permute.xlu0 %394 }
 0x264   :  { %v360_v62 = vmax.f32 %v358_v51, %v359_v56  ;;  %v254_v63 = vmax.f32 %v252_v52, %v253_v57  ;;  %v301_v0 = vrot.slane %v300_v58, 2  ;;  %v195_v1 = vrot.slane %v194_v59, 2 }
 0x266   :  { %v361_v3 = vrot.slane %v360_v62, 1  ;;  %v255_v5 = vrot.slane %v254_v63, 1  ;;  %v302_v7 = vmax.f32 %v300_v58, %v301_v0  ;;  %v196_v8 = vmax.f32 %v194_v59, %v195_v1 }
 0x267   :  { %v160_v10 = vpop.permute.xlu0 %159 }
 0x268   :  { %v362_v21 = vmax.f32 %v360_v62, %v361_v3  ;;  %v256_v23 = vmax.f32 %v254_v63, %v255_v5  ;;  %v303_v25 = vrot.slane %v302_v7, 1  ;;  %v197_v15 = vrot.slane %v196_v8, 1 }
 0x269   :  { %v1134_v26 = vadd.f32 %v160_v10, %v1049_v24  ;;  %v415_v24 = vld [vmem:[%s1281_s2 + $0x20] sm:$0xff] }
 0x26a   :  { %v363_v30 = vsub.f32 %v350_v40, %v362_v21  ;;  %v364_v31 = vsub.f32 %v1093_v39, %v362_v21  ;;  %v257_v32 = vsub.f32 %v244_v41, %v256_v23  ;;  %v258_v33 = vsub.f32 %v1091_v38, %v256_v23  ;;  %807 = vmatpush3.msra.mxu1 %v415_v24 }
 0x26b   :  { %v304_v34 = vmax.f32 %v302_v7, %v303_v25  ;;  %v198_v35 = vmax.f32 %v196_v8, %v197_v15  ;;  %513 = vrot.lane.b32.xlu0 %v1134_v26, %s921_s17  ;;  %808 = vmatprep.subr.mxu1 %v919_v4 }
 0x26c   :  { %v365_v36 = vmul.f32 1.442695, %v363_v30  ;;  %v367_v37 = vmul.f32 1.442695, %v364_v31  ;;  %v259_v40 = vmul.f32 1.442695, %v257_v32  ;;  %809 = vmatpush3.msra.mxu1 %v414_v42 }
 0x26d   :  { %v261_v39 = vmul.f32 1.442695, %v258_v33  ;;  %v305_v41 = vsub.f32 %v1103_v48, %v304_v34  ;;  %v199_v38 = vsub.f32 %v1105_v49, %v198_v35  ;;  %810 = vmatprep.subr.mxu1 %v919_v4 }
 0x26e   :  { %875 = vpow2.f32 %v365_v36 }
 0x26f   :  { %877 = vpow2.f32 %v367_v37  ;;  %v306_v43 = vmul.f32 1.442695, %v305_v41  ;;  %v200_v44 = vmul.f32 1.442695, %v199_v38 }
 0x270   :  { %879 = vpow2.f32 %v259_v40 }
 0x271   :  { %881 = vpow2.f32 %v261_v39 }
 0x272   :  { %883 = vpow2.f32 %v306_v43 }
 0x273   :  { %885 = vpow2.f32 %v200_v44 }
 0x27b   :  { %v876_v45 = vpop.eup %875 }
 0x27c   :  { %v878_v46 = vpop.eup %877 }
 0x27d   :  { %v880_v47 = vpop.eup %879  ;;  %v369_v48 = vadd.f32 %v878_v46, %v876_v45 }
 0x27e   :  { %v882_v49 = vpop.eup %881 }
 0x27f   :  { %v884_v50 = vpop.eup %883  ;;  %v370_v51 = vrot.slane %v369_v48, 4  ;;  %v263_v52 = vadd.f32 %v882_v49, %v880_v47 }
 0x280   :  { %v886_v53 = vpop.eup %885  ;;  %v308_v54 = vrot.slane %v884_v50, 4 }
 0x281   :  { %v371_v55 = vadd.f32 %v370_v51, %v369_v48  ;;  %v264_v56 = vrot.slane %v263_v52, 4  ;;  %v202_v57 = vrot.slane %v886_v53, 4 }
 0x282   :  { %v309_v58 = vadd.f32 %v884_v50, %v308_v54 }
 0x283   :  { %v372_v59 = vrot.slane %v371_v55, 2  ;;  %v265_v61 = vadd.f32 %v264_v56, %v263_v52  ;;  %v203_v62 = vadd.f32 %v886_v53, %v202_v57  ;;  %v412_v56 = vld [vmem:[%s1281_s2 + $0x8] sm:$0xff] }
 0x284   :  { %v310_v63 = vrot.slane %v309_v58, 2 }
 0x285   :  { %v373_v0 = vadd.f32 %v372_v59, %v371_v55  ;;  %v266_v1 = vrot.slane %v265_v61, 2  ;;  %v204_v2 = vrot.slane %v203_v62, 2  ;;  %v413_v55 = vld [vmem:[%s1281_s2 + $0x10] sm:$0xff] }
 0x286   :  { %v311_v3 = vadd.f32 %v310_v63, %v309_v58  ;;  %811 = vmatpush3.msra.mxu1 %v413_v55 }
 0x287   :  { %v374_v5 = vrot.slane %v373_v0, 1  ;;  %v267_v7 = vadd.f32 %v266_v1, %v265_v61  ;;  %v205_v8 = vadd.f32 %v204_v2, %v203_v62  ;;  %812 = vmatprep.subr.mxu1 %v919_v4 }
 0x288   :  { %v312_v10 = vrot.slane %v311_v3, 1  ;;  %813 = vmatpush3.msra.mxu1 %v412_v56 }
 0x289   :  { %v375_v11 = vadd.f32 %v374_v5, %v373_v0  ;;  %v268_v21 = vrot.slane %v267_v7, 1  ;;  %v206_v23 = vrot.slane %v205_v8, 1  ;;  %814 = vmatprep.subr.mxu1 %v919_v4 }
 0x28a   :  { %v313_v25 = vadd.f32 %v312_v10, %v311_v3  ;;  %v411_v3 = vld [vmem:[%s1281_s2] sm:$0xff] }
 0x28b   :  { %887 = vrcp.f32 %v375_v11  ;;  %v269_v15 = vadd.f32 %v268_v21, %v267_v7  ;;  %v207_v29 = vadd.f32 %v206_v23, %v205_v8  ;;  %815 = vmatpush3.msra.mxu1 %v411_v3 }
 0x28c   :  { %889 = vrcp.f32 %v313_v25 }
 0x28d   :  { %891 = vrcp.f32 %v269_v15 }
 0x28e   :  { %893 = vrcp.f32 %v207_v29 }
 0x298   :  { %v888_v30 = vpop.eup %887 }
 0x299   :  { %v890_v31 = vpop.eup %889  ;;  %v377_v32 = vmul.f32 %v888_v30, %v876_v45  ;;  %v378_v33 = vmul.f32 %v888_v30, %v878_v46 }
 0x29a   :  { %v892_v34 = vpop.eup %891  ;;  %v315_v35 = vmul.f32 %v890_v31, %v884_v50 }
 0x29b   :  { %v894_v24 = vpop.eup %893  ;;  %v271_v36 = vmul.f32 %v892_v34, %v880_v47  ;;  %v272_v37 = vmul.f32 %v892_v34, %v882_v49  ;;  %v379_v40 = vmul.f32 %v377_v32, %v1034_v19  ;;  %v380_v39 = vmul.f32 %v378_v33, %v1042_v20 }
 0x29c   :  { %v209_v41 = vmul.f32 %v894_v24, %v886_v53  ;;  %v316_v38 = vmul.f32 %v315_v35, %v1006_v16  ;;  %v426_v24 = vsub.s32 2, %v962_v6 }
 0x29d   :  { %v273_v42 = vmul.f32 %v271_v36, %v1018_v17  ;;  %v274_v43 = vmul.f32 %v272_v37, %v1026_v18  ;;  %v381_v44 = vsel %vm29_vm0, %v379_v40, 0.0  ;;  %v382_v45 = vsel %vm29_vm0, %v380_v39, 0.0 }
 0x29e   :  { %v383_v46 = vadd.f32 %v382_v45, %v381_v44  ;;  %v210_v48 = vmul.f32 %v209_v41, %v992_v14  ;;  %v317_v47 = vsel %vm29_vm0, %v316_v38, 0.0  ;;  %v427_v36 = vrot.slane %v982_v12, %v426_v24 }
 0x29f   :  { %v275_v19 = vsel %vm29_vm0, %v273_v42, 0.0  ;;  %v276_v20 = vsel %vm29_vm0, %v274_v43, 0.0  ;;  %v318_v49 = vrot.slane %v317_v47, 4 }
 0x2a0   :  { %v277_v50 = vadd.f32 %v276_v20, %v275_v19  ;;  %v384_v51 = vrot.slane %v383_v46, 4  ;;  %v211_v17 = vsel %vm29_vm0, %v210_v48, 0.0  ;;  %v555_v19 = vld [vmem:[%s1281_s2 + $0xc8] sm:$0xff]  ;;  %v553_v20 = vld [vmem:[%s1281_s2 + $0xb8] sm:$0xff] }
 0x2a1   :  { %v212_v52 = vrot.slane %v211_v17, 4  ;;  %v319_v18 = vadd.f32 %v318_v49, %v317_v47  ;;  %v1199_v47 = vrot.slane %v982_v12, %v1057_v28  ;;  %820 = vmatpush3.msra.mxu0 %v555_v19  ;;  %v552_v12 = vld [vmem:[%s1281_s2 + $0xb0] sm:$0xff]  ;;  %v551_v49 = vld [vmem:[%s1281_s2 + $0xa8] sm:$0xff] }
 0x2a2   :  { %v278_v53 = vrot.slane %v277_v50, 4  ;;  %v385_v54 = vadd.f32 %v384_v51, %v383_v46  ;;  %821 = vmatprep.subr.mxu0 %v919_v4  ;;  %v549_v51 = vld [vmem:[%s1281_s2 + $0x98] sm:$0xff] }
 0x2a3   :  { %v213_v57 = vadd.f32 %v212_v52, %v211_v17  ;;  %v320_v58 = vrot.slane %v319_v18, 2  ;;  %v548_v17 = vld [vmem:[%s1281_s2 + $0x90] sm:$0xff]  ;;  %v547_v52 = vld [vmem:[%s1281_s2 + $0x88] sm:$0xff] }
 0x2a4   :  { %v279_v59 = vadd.f32 %v278_v53, %v277_v50  ;;  %v386_v61 = vrot.slane %v385_v54, 2  ;;  %v550_v50 = vld [vmem:[%s1281_s2 + $0xa0] sm:$0xff]  ;;  %v545_v53 = vld [vmem:[%s1281_s2 + $0x78] sm:$0xff] }
 0x2a5   :  { %v214_v62 = vrot.slane %v213_v57, 2  ;;  %v321_v1 = vadd.f32 %v320_v58, %v319_v18  ;;  %v546_v18 = vld [vmem:[%s1281_s2 + $0x80] sm:$0xff] }
 0x2a6   :  { %v280_v63 = vrot.slane %v279_v59, 2  ;;  %v387_v0 = vadd.f32 %v386_v61, %v385_v54  ;;  %v544_v54 = vld [vmem:[%s1281_s2 + $0x70] sm:$0xff] }
 0x2a7   :  { %v215_v2 = vadd.f32 %v214_v62, %v213_v57  ;;  %v322_v21 = vrot.slane %v321_v1, 1 }
 0x2a8   :  { %v281_v5 = vadd.f32 %v280_v63, %v279_v59  ;;  %v388_v7 = vrot.slane %v387_v0, 1 }
 0x2a9   :  { %v216_v11 = vrot.slane %v215_v2, 1  ;;  %v323_v29 = vadd.f32 %v322_v21, %v321_v1 }
 0x2aa   :  { %v282_v8 = vrot.slane %v281_v5, 1  ;;  %v389_v10 = vadd.f32 %v388_v7, %v387_v0 }
 0x2ab   :  { %v217_v15 = vadd.f32 %v216_v11, %v215_v2 }
 0x2ac   :  { %v283_v23 = vadd.f32 %v282_v8, %v281_v5 }
 0x2ad   :  { %v1183_v30 = vsel %vm390_vm3, %v217_v15, %v323_v29 }
 0x2ae   :  { %v392_v25 = vsel %vm390_vm3, %v283_v23, %v389_v10 }
 0x2af   :  { %398 = vrot.lane.b32.xlu1 %v392_v25, %s925_s0 }
 0x2b3   :  { %402 = vrot.lane.b32.xlu1 %v1183_v30, %s926_s21 }
 0x2b7   :  { %503 = vrot.lane.b32.xlu1 %v1134_v26, %s920_s8 }
 0x2dd   :  { %v514_v44 = vpop.permute.xlu0 %513 }
 0x321   :  { %v399_v31 = vpop.permute.xlu1 %398 }
 0x322   :  { %v406_v32 = vsel %vm405_vm4, %v1119_v60, %v399_v31 }
 0x325   :  { %v403_v33 = vpop.permute.xlu1 %402 }
 0x326   :  { %v408_v34 = vsel %vm407_vm5, %v406_v32, %v403_v33 }
 0x327   :  { %v410_v35 = vsel %vm409_vm6, %v408_v34, 0.0 }
 0x328   :  { %817 = vmatmul.mubr.msk.f32.vlgmr.msra.gmra.mxu1 %vm428_vm7, %v410_v35 }
 0x329   :  { %v504_v39 = vpop.permute.xlu1 %503 }
 0x3e8   :  { %v498_v37 = vpop.f32.mrf.mxu1 }
 0x3e9   :  { %v499_v40 = vadd.f32 %v498_v37, %v427_v36 }
 0x3ea   :  { %v818_v26 = vpop.f32.mrf.mxu1 }
 0x3eb   :  { %v506_v41 = vadd.f32 %v504_v39, %v499_v40 }
 0x3ed   :  { %v761_v38 = vmul.f32 -1.442695, %v506_v41 }
 0x3ef   :  { %895 = vpow2.f32 %v761_v38 }
 0x3fc   :  { %v896_v42 = vpop.eup %895 }
 0x3fd   :  { %v510_v43 = vadd.f32 1.0, %v896_v42 }
 0x3ff   :  { %897 = vrcp.f32 %v510_v43 }
 0x40c   :  { %v898_v60 = vpop.eup %897 }
 0x40d   :  { %v516_v45 = vmul.f32 %v898_v60, %v514_v44  ;;  %v523_v56 = vsub.f32 1.0, %v898_v60 }
 0x40f   :  { %518 = vrot.lane.b32.xlu1 %v516_v45, %s922_s18 }
 0x413   :  { %529 = vrot.lane.b32.xlu1 %v987_v13, %s921_s17  ;;  %v554_v13 = vld [vmem:[%s1281_s2 + $0xc0] sm:$0xff]  ;;  %s927_s2 = smov 40  }
 0x414   :  { %822 = vmatpush3.msra.mxu0 %v554_v13 }
 0x415   :  { %823 = vmatprep.subr.mxu0 %v919_v4 }
 0x416   :  { %824 = vmatpush3.msra.mxu0 %v553_v20 }
 0x417   :  { %534 = vrot.lane.b32.xlu1 %v392_v25, %s921_s17  ;;  %825 = vmatprep.subr.mxu0 %v919_v4 }
 0x418   :  { %826 = vmatpush3.msra.mxu0 %v552_v12 }
 0x419   :  { %827 = vmatprep.subr.mxu0 %v919_v4 }
 0x41a   :  { %828 = vmatpush3.msra.mxu0 %v551_v49 }
 0x41b   :  { %829 = vmatprep.subr.mxu0 %v919_v4 }
 0x41c   :  { %830 = vmatpush3.msra.mxu0 %v550_v50 }
 0x41d   :  { %831 = vmatprep.subr.mxu0 %v919_v4 }
 0x41e   :  { %832 = vmatpush3.msra.mxu0 %v549_v51 }
 0x41f   :  { %833 = vmatprep.subr.mxu0 %v919_v4 }
 0x420   :  { %834 = vmatpush3.msra.mxu0 %v548_v17 }
 0x421   :  { %835 = vmatprep.subr.mxu0 %v919_v4 }
 0x422   :  { %836 = vmatpush3.msra.mxu0 %v547_v52 }
 0x423   :  { %837 = vmatprep.subr.mxu0 %v919_v4 }
 0x424   :  { %838 = vmatpush3.msra.mxu0 %v546_v18 }
 0x425   :  { %839 = vmatprep.subr.mxu0 %v919_v4 }
 0x426   :  { %840 = vmatpush3.msra.mxu0 %v545_v53 }
 0x427   :  { %841 = vmatprep.subr.mxu0 %v919_v4 }
 0x428   :  { %842 = vmatpush3.msra.mxu0 %v544_v54 }
 0x481   :  { %v519_v6 = vpop.permute.xlu1 %518 }
 0x482   :  { %v521_v46 = vadd.f32 %v519_v6, %v499_v40 }
 0x484   :  { %899 = vtanh.f32 %v521_v46 }
 0x485   :  { %v530_v55 = vpop.permute.xlu1 %529 }
 0x486   :  { %v532_v58 = vmul.f32 %v898_v60, %v530_v55 }
 0x491   :  { %v900_v48 = vpop.eup %899 }
 0x492   :  { %525 = vrot.lane.b32.xlu0 %v900_v48, %s920_s8 }
 0x496   :  { %638 = vrot.lane.b32.xlu0 %v1199_v47, %s921_s17 }
 0x504   :  { %v526_v57 = vpop.permute.xlu0 %525 }
 0x505   :  { %v528_v59 = vmul.f32 %v526_v57, %v523_v56 }
 0x507   :  { %v1250_v61 = vadd.f32 %v532_v58, %v528_v59 }
 0x508   :  { %v639_v62 = vpop.permute.xlu0 %638 }
 0x509   :  { %v641_v63 = vadd.f32 %v639_v62, %v1046_v22  ;;  %v677_v0 = vadd.f32 %v639_v62, %v1054_v27  ;;  %538 = vrot.lane.b32.xlu0 %v1250_v61, %s921_s17  ;;  %v646_v4 = vrot.slane %v1250_v61, %v971_v9  ;;  %v682_v2 = vrot.slane %v1250_v61, %v1057_v28  ;;  %v535_v22 = vpop.permute.xlu1 %534 }
 0x50a   :  { %v541_v27 = vsel %vm29_vm0, %v1183_v30, %v535_v22 }
 0x50b   :  { %901 = vtanh.f32 %v641_v63 }
 0x50c   :  { %903 = vtanh.f32 %v677_v0 }
 0x518   :  { %v902_v1 = vpop.eup %901 }
 0x519   :  { %v904_v3 = vpop.eup %903  ;;  %v647_v5 = vmul.f32 %v902_v1, %v646_v4 }
 0x51a   :  { %v683_v7 = vmul.f32 %v904_v3, %v682_v2 }
 0x51b   :  { %649 = vrot.lane.b32.xlu1 %v647_v5, %s920_s8 }
 0x51c   :  { %685 = vrot.lane.b32.xlu0 %v683_v7, %s920_s8 }
 0x57b   :  { %v539_v8 = vpop.permute.xlu0 %538 }
 0x57c   :  { %v543_v10 = vsel %vm542_vm8, %v541_v27, %v539_v8 }
 0x57d   :  { %844 = vmatmul.mubr.msk.f32.vlgmr.msra.gmra.mxu0 %vm564_vm9, %v543_v10 }
 0x58d   :  { %v650_v9 = vpop.permute.xlu1 %649 }
 0x58e   :  { %v686_v11 = vpop.permute.xlu0 %685  ;;  %v652_v28 = vsel %vm29_vm0, %v650_v9, 0.0 }
 0x58f   :  { %v688_v21 = vsel %vm29_vm0, %v686_v11, 0.0  ;;  %653 = vadd.xlane.f32.xlu1 %v652_v28 }
 0x590   :  { %689 = vadd.xlane.f32.xlu0 %v688_v21 }
 0x5a6   :  { %561 = vrot.lane.b32.xlu0 %v1199_v47, %s920_s8 }
 0x618   :  { %v654_v23 = vpop.xlane.xlu1 %653 }
 0x619   :  { %v690_v25 = vpop.xlane.xlu0 %689  ;;  %v655_v15 = vrot.slane %v654_v23, 4 }
 0x61a   :  { %v691_v29 = vrot.slane %v690_v25, 4 }
 0x61b   :  { %v656_v31 = vmax.f32 %v654_v23, %v655_v15 }
 0x61c   :  { %v692_v30 = vmax.f32 %v690_v25, %v691_v29 }
 0x61d   :  { %v657_v32 = vrot.slane %v656_v31, 2  ;;  %v562_v48 = vpop.permute.xlu0 %561 }
 0x61e   :  { %v693_v33 = vrot.slane %v692_v30, 2 }
 0x61f   :  { %v658_v34 = vmax.f32 %v656_v31, %v657_v32 }
 0x620   :  { %v694_v35 = vmax.f32 %v692_v30, %v693_v33 }
 0x621   :  { %v659_v24 = vrot.slane %v658_v34, 1 }
 0x622   :  { %v695_v36 = vrot.slane %v694_v35, 1 }
 0x623   :  { %v660_v37 = vmax.f32 %v658_v34, %v659_v24 }
 0x624   :  { %v696_v40 = vmax.f32 %v694_v35, %v695_v36 }
 0x625   :  { %v661_v39 = vsub.f32 %v654_v23, %v660_v37 }
 0x626   :  { %v697_v26 = vsub.f32 %v690_v25, %v696_v40 }
 0x627   :  { %v662_v41 = vmul.f32 1.442695, %v661_v39 }
 0x628   :  { %v698_v38 = vmul.f32 1.442695, %v697_v26 }
 0x629   :  { %905 = vpow2.f32 %v662_v41 }
 0x62a   :  { %907 = vpow2.f32 %v698_v38 }
 0x636   :  { %v906_v42 = vpop.eup %905 }
 0x637   :  { %v908_v43 = vpop.eup %907  ;;  %v665_v60 = vmul.f32 %v906_v42, %v992_v14 }
 0x638   :  { %v701_v44 = vmul.f32 %v908_v43, %v1006_v16 }
 0x639   :  { %v667_v45 = vsel %vm666_vm10, %v665_v60, 0.0 }
 0x63a   :  { %v668_v6 = vrot.slane %v667_v45, 4  ;;  %v702_v46 = vsel %vm666_vm10, %v701_v44, 0.0 }
 0x63b   :  { %v703_v47 = vrot.slane %v702_v46, 4 }
 0x63c   :  { %v669_v19 = vadd.f32 %v668_v6, %v667_v45 }
 0x63d   :  { %v634_v13 = vpop.f32.mrf.mxu0  ;;  %v704_v20 = vadd.f32 %v703_v47, %v702_v46 }
 0x63e   :  { %v635_v12 = vadd.f32 %v634_v13, %v562_v48  ;;  %v670_v49 = vrot.slane %v669_v19, 2 }
 0x63f   :  { %v845_v50 = vpop.f32.mrf.mxu0  ;;  %v705_v51 = vrot.slane %v704_v20, 2 }
 0x640   :  { %v714_v17 = vsel %vm713_vm11, %v635_v12, -inf  ;;  %v671_v52 = vadd.f32 %v670_v49, %v669_v19 }
 0x641   :  { %715 = vmax.xlane.f32.xlu1 %v714_v17  ;;  %v706_v14 = vadd.f32 %v705_v51, %v704_v20 }
 0x642   :  { %v672_v18 = vrot.slane %v671_v52, 1 }
 0x643   :  { %v707_v16 = vrot.slane %v706_v14, 1 }
 0x644   :  { %v673_v53 = vadd.f32 %v672_v18, %v671_v52 }
 0x645   :  { %v708_v54 = vadd.f32 %v707_v16, %v706_v14 }
 0x646   :  { %909 = vlog2.f32 %v673_v53 }
 0x647   :  { %911 = vlog2.f32 %v708_v54 }
 0x653   :  { %v910_v55 = vpop.eup %909 }
 0x654   :  { %v912_v56 = vpop.eup %911  ;;  %v675_v57 = vmul.f32 0.6931472, %v910_v55 }
 0x655   :  { %v710_v58 = vmul.f32 0.6931472, %v912_v56 }
 0x656   :  { %v676_v59 = vadd.f32 %v675_v57, %v660_v37 }
 0x657   :  { %v711_v62 = vadd.f32 %v710_v58, %v696_v40 }
 0x659   :  { %v712_v63 = vsel %vm390_vm3, %v676_v59, %v711_v62 }
 0x65a   :  { %v718_v0 = vsel %vm717_vm12, %v712_v63, -inf }
 0x65b   :  { %719 = vmax.xlane.f32.xlu1 %v718_v0 }
 0x6ca   :  { %v716_v4 = vpop.xlane.xlu1 %715 }
 0x6e4   :  { %v720_v1 = vpop.xlane.xlu1 %719 }
 0x6e5   :  { %v721_v2 = vmax.f32 %v716_v4, %v720_v1 }
 0x6e7   :  { %v722_v3 = vsub.f32 %v635_v12, %v721_v2  ;;  %v725_v5 = vsub.f32 %v712_v63, %v721_v2 }
 0x6e9   :  { %v723_v7 = vmul.f32 1.442695, %v722_v3  ;;  %v726_v22 = vmul.f32 1.442695, %v725_v5 }
 0x6eb   :  { %913 = vpow2.f32 %v723_v7 }
 0x6ec   :  { %915 = vpow2.f32 %v726_v22 }
 0x6f8   :  { %v914_v27 = vpop.eup %913 }
 0x6f9   :  { %v916_v8 = vpop.eup %915  ;;  %v733_v10 = vsel %vm713_vm11, %v914_v27, 0.0 }
 0x6fa   :  { %729 = vrot.lane.b32.xlu1 %v916_v8, %s920_s8  ;;  %734 = vadd.xlane.f32.xlu0 %v733_v10 }
 0x710   :  { %742 = vrot.lane.b32.xlu0 %v1250_v61, %s927_s2 }
 0x76c   :  { %v730_v9 = vpop.permute.xlu1 %729 }
 0x76d   :  { %v736_v11 = vsel %vm713_vm11, %v730_v9, 0.0  ;;  %v732_v25 = vadd.f32 %v914_v27, %v730_v9 }
 0x76e   :  { %737 = vadd.xlane.f32.xlu1 %v736_v11 }
 0x783   :  { %v735_v28 = vpop.xlane.xlu0 %734 }
 0x787   :  { %v743_v31 = vpop.permute.xlu0 %742 }
 0x7f7   :  { %v738_v21 = vpop.xlane.xlu1 %737 }
 0x7f8   :  { %v739_v23 = vadd.f32 %v738_v21, %v735_v28 }
 0x7fa   :  { %917 = vrcp.f32 %v739_v23 }
 0x807   :  { %v918_v15 = vpop.eup %917 }
 0x808   :  { %v741_v29 = vmul.f32 %v918_v15, %v732_v25 }
 0x80a   :  { %v746_v30 = vsel %vm745_vm13, %v741_v29, %v743_v31 }
 0x80b   :  { %v747_v32 = vsel %vm428_vm7, %v746_v30, 0.0 }
 0x80c   :  { %748 = vst [vmem:[%s1283_s3] sm:$0x3] %v747_v32 }

</bundles_post_ra>
